<compile_context>
chip_gen: v7x
topology: tpu7x:2x2x1
jax: 0.10.0
libtpu: 0.0.40
codegen_flags: <defaults>
</compile_context>

<pallas_src>
import jax
import jax.numpy as jnp
from jax.experimental import pallas as pl
from jax.experimental.pallas import tpu as pltpu


def _round_up(a: int, b: int) -> int:
    return ((a + b - 1) // b) * b


# ----------------------------- small / gridless path -------------------------
def _mylinear_small_kernel(x_ref, w_ref, b_ref, o_ref):
    # One MXU pass + bias add + ReLU; operands already resident in VMEM.
    acc = jnp.dot(x_ref[...], w_ref[...], preferred_element_type=jnp.float32)
    acc = acc + b_ref[...]                        # broadcast (1, N) over rows
    o_ref[...] = jnp.maximum(acc, 0.0).astype(o_ref.dtype)


def _mylinear_small(x, weight, bias2d):
    M, _ = x.shape
    _, N = weight.shape
    return pl.pallas_call(
        _mylinear_small_kernel,
        out_shape=jax.ShapeDtypeStruct((M, N), jnp.float32),
        in_specs=[
            pl.BlockSpec(memory_space=pltpu.MemorySpace.VMEM),
            pl.BlockSpec(memory_space=pltpu.MemorySpace.VMEM),
            pl.BlockSpec(memory_space=pltpu.MemorySpace.VMEM),
        ],
        out_specs=pl.BlockSpec(memory_space=pltpu.MemorySpace.VMEM),
    )(x, weight, bias2d)


# --------------------------------- tiled path ---------------------------------
def _mylinear_tiled_kernel(x_ref, w_ref, b_ref, o_ref, acc_ref):
    k = pl.program_id(2)

    @pl.when(k == 0)
    def _init():
        acc_ref[...] = jnp.zeros_like(acc_ref)

    # bf16 (or whatever compute dtype) inputs, f32 accumulation on the MXU.
    acc_ref[...] += jnp.dot(x_ref[...], w_ref[...],
                            preferred_element_type=jnp.float32)

    @pl.when(k == pl.num_programs(2) - 1)
    def _finalize():
        # Epilogue (bias + ReLU) runs once, off the K-loop critical path, in f32.
        y = acc_ref[...] + b_ref[...]
        o_ref[...] = jnp.maximum(y, 0.0).astype(o_ref.dtype)


def _mylinear_tiled(x, weight, bias2d, *, tm, tn, tk, compute_dtype):
    M, K = x.shape
    _, N = weight.shape

    # Shrink tiles for smallish dims while keeping sublane/lane alignment.
    tm = min(tm, _round_up(M, 16))
    tn = min(tn, _round_up(N, 128))    # lane-dense output blocks
    tk = min(tk, _round_up(K, 128))

    Mp, Kp, Np = _round_up(M, tm), _round_up(K, tk), _round_up(N, tn)

    xp = jnp.pad(x, ((0, Mp - M), (0, Kp - K))).astype(compute_dtype)
    wp = jnp.pad(weight, ((0, Kp - K), (0, Np - N))).astype(compute_dtype)
    bp = jnp.pad(bias2d, ((0, 0), (0, Np - N)))        # bias stays f32

    out = pl.pallas_call(
        _mylinear_tiled_kernel,
        out_shape=jax.ShapeDtypeStruct((Mp, Np), jnp.float32),
        grid=(Mp // tm, Np // tn, Kp // tk),
        in_specs=[
            pl.BlockSpec((tm, tk), lambda i, j, k: (i, k)),
            pl.BlockSpec((tk, tn), lambda i, j, k: (k, j)),
            pl.BlockSpec((1, tn), lambda i, j, k: (0, j)),   # bias resident per N tile
        ],
        out_specs=pl.BlockSpec((tm, tn), lambda i, j, k: (i, j)),
        scratch_shapes=[pltpu.VMEM((tm, tn), jnp.float32)],
        compiler_params=pltpu.CompilerParams(
            dimension_semantics=("parallel", "parallel", "arbitrary"),
            vmem_limit_bytes=32 * 1024 * 1024,
        ),
    )(xp, wp, bp)
    return out[:M, :N]


# ------------------------------- public wrapper --------------------------------
def mylinear_forward(x, weight, bias, *, tm=256, tn=256, tk=512,
                     compute_dtype=jnp.bfloat16):
    """Y = relu(X @ W + b). Dispatches to a gridless kernel for tiny shapes,
    and a tiled M/N/K-grid kernel (bf16 MXU inputs, f32 accumulate) otherwise."""
    M, K = x.shape
    K2, N = weight.shape
    assert K == K2, "in_units mismatch between X and weight"
    bias2d = bias.reshape(1, N).astype(jnp.float32)

    if M <= tm and N <= tn and K <= tk:
        # Everything fits in a single block: skip grid / pipelining entirely.
        return _mylinear_small(x.astype(jnp.float32),
                               weight.astype(jnp.float32), bias2d)
    return _mylinear_tiled(x, weight, bias2d, tm=tm, tn=tn, tk=tk,
                           compute_dtype=compute_dtype)


if __name__ == "__main__":
    key = jax.random.PRNGKey(0)
    k_w, k_b, k_x, k_w2, k_b2, k_x2 = jax.random.split(key, 6)

    # --- MyLinear(5, 3), batch=2: the spec's toy size -> small/gridless path ---
    in_units, units, batch = 5, 3, 2
    weight = jax.random.normal(k_w, (in_units, units), dtype=jnp.float32)
    bias = jax.random.normal(k_b, (units,), dtype=jnp.float32)
    x = jax.random.normal(k_x, (batch, in_units), dtype=jnp.float32)

    out = jax.block_until_ready(mylinear_forward(x, weight, bias))
    ref = jnp.maximum(jnp.dot(x, weight) + bias, 0.0)
    assert out.shape == (batch, units)
    assert jnp.allclose(out, ref, atol=1e-5, rtol=1e-5)

    # --- Sanity-check the tiled / bf16 path at a moderate "real layer" size ---
    M, K, N = 256, 1024, 384
    w2 = jax.random.normal(k_w2, (K, N), dtype=jnp.float32)
    b2 = jax.random.normal(k_b2, (N,), dtype=jnp.float32)
    x2 = jax.random.normal(k_x2, (M, K), dtype=jnp.float32)

    out2 = jax.block_until_ready(mylinear_forward(x2, w2, b2))
    ref2 = jnp.maximum(
        jnp.dot(x2.astype(jnp.bfloat16), w2.astype(jnp.bfloat16),
                preferred_element_type=jnp.float32) + b2, 0.0)
    assert out2.shape == (M, N)
    assert jnp.allclose(out2, ref2, atol=2e-2, rtol=2e-2)

    print("KERNEL_OK")
</pallas_src>

<mosaic_0001>
module attributes {stable_mosaic.version = 11 : i64} {
  func.func @_mylinear_small_kernel(%arg0: memref<2x5xf32, #tpu.memory_space<vmem>>, %arg1: memref<5x3xf32, #tpu.memory_space<vmem>>, %arg2: memref<1x3xf32, #tpu.memory_space<vmem>>, %arg3: memref<2x3xf32, #tpu.memory_space<vmem>>) attributes {dimension_semantics = [], scalar_prefetch = 0 : i64, scratch_operands = 0 : i64, tpu.core_type = #tpu.core_type<tc>} {
    %c0 = arith.constant 0 : index
    %c0_0 = arith.constant 0 : index
    %0 = vector.load %arg0[%c0, %c0_0] : memref<2x5xf32, #tpu.memory_space<vmem>>, vector<2x5xf32>
    %c0_1 = arith.constant 0 : index
    %c0_2 = arith.constant 0 : index
    %1 = vector.load %arg1[%c0_1, %c0_2] : memref<5x3xf32, #tpu.memory_space<vmem>>, vector<5x3xf32>
    %cst = arith.constant dense<0.000000e+00> : vector<2x3xf32>
    %2 = tpu.matmul %0, %1, %cst {dimension_numbers = #tpu.dot_dimension_numbers<[1], [0], [0], [1], [0, 0, 1, 1], [], []>} : vector<2x5xf32>, vector<5x3xf32>, vector<2x3xf32> -> vector<2x3xf32>
    %c0_3 = arith.constant 0 : index
    %c0_4 = arith.constant 0 : index
    %3 = vector.load %arg2[%c0_3, %c0_4] : memref<1x3xf32, #tpu.memory_space<vmem>>, vector<1x3xf32>
    %4 = vector.broadcast %3 : vector<1x3xf32> to vector<2x3xf32>
    %5 = arith.addf %2, %4 : vector<2x3xf32>
    %cst_5 = arith.constant 0.000000e+00 : f32
    %6 = vector.broadcast %cst_5 : f32 to vector<2x3xf32>
    %7 = arith.maximumf %5, %6 : vector<2x3xf32>
    %c0_6 = arith.constant 0 : index
    %c0_7 = arith.constant 0 : index
    %8 = vector.load %arg3[%c0_6, %c0_7] : memref<2x3xf32, #tpu.memory_space<vmem>>, vector<2x3xf32>
    tpu.vector_store %arg3[%c0_6, %c0_7], %7 {strides = array<i32>} : memref<2x3xf32, #tpu.memory_space<vmem>>, vector<2x3xf32>,
    return
  }
}

</mosaic_0001>

<bundles_post_ra>
// kernel: tpu_custom_call.1
= control target key start
LH: loop header
LB: loop body
LE: loop exit
PB: predicated region body
PF: predicated region fallthrough
CT: control target
= control target key end

     0   :  { %vm28_vm0 = vcmask 1044480   ;;  %vm24_vm1 = vcmask 39936   ;;  %v156_v1 = vmov 0.0   ;;  %vm157_vm2 = vmmov 0   ;;  %s200_s0 = inlined_call_operand.vmem [shape: f32[2,5], index: 0, kind: input, shape index: {}]   ;;  %s201_s1 = inlined_call_operand.vmem [shape: f32[5,3], index: 1, kind: input, shape index: {}]   ;;  %s202_s2 = inlined_call_operand.vmem [shape: f32[1,3], index: 2, kind: input, shape index: {}]   ;;  %s203_s3 = inlined_call_operand.hbm [shape: f32[2,3], index: 3, kind: output, shape index: {}]  }
   0x1   :  { %v16_v0 = vld [vmem:[%s201_s1] sm:$0x1f]  ;;  %124 = vmatprep.subr.mxu0 %v156_v1  ;;  %126 = vmatprep.mubr.msk.f32.mxu0 %vm157_vm2, %v156_v1 }
   0x2   :  { %v15_v2 = vld [vmem:[%s200_s0] sm:$0x3] }
   0x3   :  { %8 = vsyncpa [#allocation3], 0  ;;  %125 = vmatpush3.msk.msra.mxu0 %vm28_vm0, %v16_v0  ;;  %v119_v3 = vld [vmem:[%s202_s2] ss:$0 sm:$0xff]  ;;  %s158_s18 = smov [#allocation2]   ;;  %vm103_vm3 = vcmask 17408  }
   0x4   :  { %127 = vmatmul.mubr.msk.f32.vlgmr.msra.gmra.mrb[0].mxu0 %vm24_vm1, %v15_v2  ;;  %s111_s1 = sshll.u32 %s158_s18, 4  ;;  %s112_s1 = int_to_ptr.vmem [resolvable:$true] %s111_s1 }
   0x5   :  { %s132_s19 = scalar_lea.vmem %s112_s1, 32  ;;  %p137_p1 = scmp.lt.s32.totalorder %s112_s1, %s112_s1 }
   0x6   :  { %p133_p0 = scmp.ne.s32.totalorder %s112_s1, %s132_s19  ;;  %p138_p2 = scmp.lt.s32.totalorder %s132_s19, %s132_s19 }
   0x8   :  { %p139_p3 = por %p138_p2, %p137_p1 }
   0xa   :  { %p140_p4 = pnand %p139_p3, %p133_p0 }
  0xd7   :  { %v98_v4 = vpop.f32.mrb[0].mxu0 }
  0xd8   :  { %v99_v5 = vadd.f32 %v119_v3, %v98_v4  ;;  %v128_v6 = vpop.f32.mrb[1].mxu0 }
  0xda   :  { %v102_v7 = vmax.f32 %v99_v5, 0.0 }
  0xdc   :  { %104 = vst.msk [vmem:[#allocation2] sm:$0x3] %vm103_vm3, %v102_v7 }
  0xdd   :  { %143 = shalt.err (!%p140_p4)
}
  0xde   :  { %s144_s2 = scalar_lea.hbm %s203_s3, 32 }
  0xdf   :  { %p145_p5 = scmp.ne.s32.totalorder %s203_s3, %s144_s2  ;;  %p148_p6 = scmp.lt.u32.totalorder %s144_s2, %s203_s3 }
  0xe1   :  { %p150_p7 = pnand %p148_p6, %p145_p5 }
  0xe3   :  { %153 = shalt.err (!%p150_p7)
}
  0xe4   :  { %114 = dma.vmem_to_hbm [thread:$0]  %s112_s1, 32, %s203_s3, [#allocation3]  }
  0xe5   :  { %154 = dma.done.wait [#allocation3], 32  }
  0xe6   :  { %155 = vsyncadd [#allocation3], 4294967264 }
  0xe7   :  { %118 = vsyncpa [#allocation3], 1 }

</bundles_post_ra>
